<compile_context>
chip_gen: v5e
topology: v5e:2x2
jax: 0.10.0
libtpu: 0.0.40
codegen_flags: <defaults>
</compile_context>

<pallas_src>
import functools

import jax
import jax.numpy as jnp
from jax.experimental import pallas as pl
from jax.experimental.pallas import tpu as pltpu

ALPHA = 0.25
GAMMA = 2
EPS = 1e-8

# geometry-slab row indices
_ROW_LOC = 0       # rows 0..3  : predicted (l, t, r, b)
_ROW_GT = 4        # rows 4..7  : assigned GT box (x1, y1, x2, y2)
_ROW_CENTER = 8    # predicted centerness
_ROW_CTGT = 9      # centerness target
_ROW_POS = 10      # positive mask
_ROW_VALID = 11    # padding mask (1 = real pixel)
_ROW_PX = 12       # pixel x coordinate
_ROW_PY = 13       # pixel y coordinate
_ROW_CLS = 14      # GT class id (float; -1 => not positive)
GEOM_ROWS = 16     # padded to a multiple of 8 sublane rows


def _pow_gamma(x):
    """x ** GAMMA for small integer GAMMA (unrolled multiplies)."""
    r = x
    for _ in range(int(GAMMA) - 1):
        r = r * x
    return r


# ---------------------------------------------------------------------------
# Loss math shared by the Pallas kernel (per tile) and the pure-JAX reference
# ---------------------------------------------------------------------------
def _loss_terms(conf, geom, recip_fn):
    """conf:(C,S,128)  geom:(GEOM_ROWS,S,128) -> 4 scalar partial sums."""
    loc_l, loc_t, loc_r, loc_b = geom[0], geom[1], geom[2], geom[3]
    gx1, gy1, gx2, gy2 = geom[4], geom[5], geom[6], geom[7]
    center = geom[_ROW_CENTER]
    ctgt = geom[_ROW_CTGT]
    pos = geom[_ROW_POS]
    valid = geom[_ROW_VALID]
    px = geom[_ROW_PX]
    py = geom[_ROW_PY]
    cls_i = geom[_ROW_CLS].astype(jnp.int32)

    conf = jnp.clip(conf, 1e-8, 1.0 - 1e-6)  # 0.99999999 rounds to 1.0 in f32

    # focal-style classification loss; select fused before the single log:
    #   negative channels : -(1-a) * conf^g     * log(1-conf)
    #   GT channel (pos)  : -a     * (1-conf)^g * log(conf)
    ch = jax.lax.broadcasted_iota(jnp.int32, conf.shape, 0)
    is_pos_ch = (ch == cls_i[None]) & (pos[None] > 0.5)
    q = jnp.where(is_pos_ch, conf, 1.0 - conf)
    coeff = jnp.where(is_pos_ch, jnp.float32(ALPHA), jnp.float32(1.0 - ALPHA))
    loss_conf = jnp.sum(
        -(coeff * _pow_gamma(1.0 - q) * jnp.log(q)) * valid[None])

    # IoU loss on positive pixels: pred box = (x-l, y-t, x+r, y+b)
    px1 = px - loc_l
    py1 = py - loc_t
    px2 = px + loc_r
    py2 = py + loc_b
    iw = jnp.maximum(jnp.minimum(px2, gx2) - jnp.maximum(px1, gx1), 0.0)
    ih = jnp.maximum(jnp.minimum(py2, gy2) - jnp.maximum(py1, gy1), 0.0)
    inter = iw * ih
    area_p = jnp.maximum(px2 - px1, 0.0) * jnp.maximum(py2 - py1, 0.0)
    area_g = (gx2 - gx1) * (gy2 - gy1)
    union = jnp.maximum(area_p + area_g - inter, EPS)
    iou = jnp.clip(inter * recip_fn(union), EPS, 1.0)
    loss_l = jnp.sum(-jnp.log(iou) * pos)

    # centerness BCE on positive pixels (nn.BCELoss on a single element)
    c = jnp.clip(center, EPS, 1.0 - EPS)
    bce = -(ctgt * jnp.log(c) + (1.0 - ctgt) * jnp.log(1.0 - c))
    loss_center = jnp.sum(bce * pos)

    poses = jnp.sum(pos)
    return loss_conf, loss_l, loss_center, poses


def _combine(loss_conf, loss_l, loss_center, poses):
    return jnp.where(
        poses > 0.0,
        loss_center + (loss_conf + loss_l) / jnp.maximum(poses, 1.0),
        loss_center + loss_conf + loss_l,
    )


# ---------------------------------------------------------------------------
# Pallas kernel: grid = (image, P-tile); P-tile axis is the reduction axis
# ---------------------------------------------------------------------------
def _fcos_loss_kernel(conf_ref, geom_ref, out_ref,
                      lc_acc, ll_acc, lcen_acc, pos_acc):
    k = pl.program_id(1)

    @pl.when(k == 0)
    def _():
        lc_acc[...] = jnp.zeros_like(lc_acc)
        ll_acc[...] = jnp.zeros_like(ll_acc)
        lcen_acc[...] = jnp.zeros_like(lcen_acc)
        pos_acc[...] = jnp.zeros_like(pos_acc)

    loss_conf, loss_l, loss_center, poses = _loss_terms(
        conf_ref[0], geom_ref[0],
        lambda u: pl.reciprocal(u, approx=True))

    lc_acc[...] += loss_conf
    ll_acc[...] += loss_l
    lcen_acc[...] += loss_center
    pos_acc[...] += poses

    @pl.when(k == pl.num_programs(1) - 1)
    def _():
        loss_img = _combine(lc_acc[...], ll_acc[...],
                            lcen_acc[...], pos_acc[...])      # (1, 128)
        out_ref[...] = loss_img.reshape(out_ref.shape)        # (1, 1, 128)


def _choose_tiling(P, C, max_step_bytes=4 << 20):
    """Pick the P-tile size (in 128-lane rows) and the padded row count."""
    S = -(-P // 128)
    if S <= 64:
        return S, S                      # single tile per image (small sizes)
    tile_s = 64                          # 8192 lanes per step
    while tile_s > 8 and (C + GEOM_ROWS) * tile_s * 128 * 4 > max_step_bytes:
        tile_s //= 2
    s_pad = -(-S // tile_s) * tile_s
    return tile_s, s_pad


def _fcos_loss_pallas(conf4, geom4, tile_s):
    B, C, S, L = conf4.shape
    assert L == 128 and S % tile_s == 0
    num_k = S // tile_s
    out = pl.pallas_call(
        _fcos_loss_kernel,
        out_shape=jax.ShapeDtypeStruct((B, 1, 128), jnp.float32),
        grid_spec=pltpu.PrefetchScalarGridSpec(
            num_scalar_prefetch=0,
            grid=(B, num_k),
            in_specs=[
                pl.BlockSpec((1, C, tile_s, 128),
                             lambda b, k: (b, 0, k, 0)),
                pl.BlockSpec((1, GEOM_ROWS, tile_s, 128),
                             lambda b, k: (b, 0, k, 0)),
            ],
            out_specs=pl.BlockSpec((1, 1, 128), lambda b, k: (b, 0, 0)),
            scratch_shapes=[pltpu.VMEM((1, 128), jnp.float32)
                            for _ in range(4)],
        ),
        compiler_params=pltpu.CompilerParams(
            # batch shards across TensorCores on megacore parts (v7x);
            # the P-tile reduction axis stays "arbitrary" and last.
            dimension_semantics=("parallel", "arbitrary"),
        ),
    )(conf4, geom4)
    per_image = out[:, 0, 0]
    return jnp.sum(per_image) / B


# ---------------------------------------------------------------------------
# Glue: pixel coords + per-pixel targets (MapMaster / judge_pos stand-in)
# ---------------------------------------------------------------------------
def _build_coords(level_shapes, strides):
    xs, ys = [], []
    for (H, W), s in zip(level_shapes, strides):
        jj, ii = jnp.meshgrid(jnp.arange(W), jnp.arange(H))  # (H, W)
        xs.append(((jj + 0.5) * s).reshape(-1).astype(jnp.float32))
        ys.append(((ii + 0.5) * s).reshape(-1).astype(jnp.float32))
    return jnp.concatenate(xs), jnp.concatenate(ys)


def _assign_targets(boxes, xs, ys):
    """boxes: (M, 5) rows [cls, x1, y1, x2, y2]; cls < 0 marks padding rows."""
    P = xs.shape[0]
    cls_b = boxes[:, 0]
    x1, y1, x2, y2 = boxes[:, 1], boxes[:, 2], boxes[:, 3], boxes[:, 4]
    l = xs[:, None] - x1[None, :]
    t = ys[:, None] - y1[None, :]
    r = x2[None, :] - xs[:, None]
    b = y2[None, :] - ys[:, None]
    inside = (l > 0) & (t > 0) & (r > 0) & (b > 0) & (cls_b[None, :] >= 0)
    areas = (x2 - x1) * (y2 - y1)
    cand = jnp.where(inside, areas[None, :], jnp.inf)
    best = jnp.argmin(cand, axis=1)                       # (P,)
    pos = inside.any(axis=1)
    idx = jnp.arange(P)
    lb, tb, rb, bb = l[idx, best], t[idx, best], r[idx, best], b[idx, best]
    cls = jnp.where(pos, cls_b[best], -1.0)
    gt = jnp.stack([x1[best], y1[best], x2[best], y2[best]], axis=0)  # (4, P)
    ctr = jnp.sqrt(
        (jnp.minimum(lb, rb) / jnp.maximum(jnp.maximum(lb, rb), EPS))
        * (jnp.minimum(tb, bb) / jnp.maximum(jnp.maximum(tb, bb), EPS)))
    ctr = jnp.where(pos, ctr, 0.0)
    return (pos.astype(jnp.float32), cls.astype(jnp.float32),
            gt.astype(jnp.float32), ctr.astype(jnp.float32))


def fcos_loss(confses, locses, centerses, labels, level_shapes, strides):
    """confses/locses/centerses: lists of 5 NCHW arrays; labels: (B, M, 5)."""
    B, C = confses[0].shape[0], confses[0].shape[1]
    P = sum(H * W for H, W in level_shapes)
    tile_s, s_pad = _choose_tiling(P, C)
    P_pad = s_pad * 128

    def flat_cat(arrs):
        return jnp.concatenate(
            [a.reshape(B, a.shape[1], -1) for a in arrs], axis=-1
        ).astype(jnp.float32)

    conf_flat = flat_cat(confses)        # (B, C, P)
    loc_flat = flat_cat(locses)          # (B, 4, P)
    center_flat = flat_cat(centerses)    # (B, 1, P)

    xs, ys = _build_coords(level_shapes, strides)          # (P,), (P,)
    pos, cls_id, gt, ctr = jax.vmap(
        functools.partial(_assign_targets, xs=xs, ys=ys))(labels)

    conf4 = jnp.pad(conf_flat, ((0, 0), (0, 0), (0, P_pad - P))
                    ).reshape(B, C, s_pad, 128)

    geom = jnp.zeros((B, GEOM_ROWS, P_pad), jnp.float32)
    geom = geom.at[:, _ROW_LOC:_ROW_LOC + 4, :P].set(loc_flat)
    geom = geom.at[:, _ROW_GT:_ROW_GT + 4, :P].set(gt)
    geom = geom.at[:, _ROW_CENTER, :P].set(center_flat[:, 0, :])
    geom = geom.at[:, _ROW_CTGT, :P].set(ctr)
    geom = geom.at[:, _ROW_POS, :P].set(pos)
    geom = geom.at[:, _ROW_VALID, :P].set(1.0)
    geom = geom.at[:, _ROW_PX, :P].set(xs[None, :])
    geom = geom.at[:, _ROW_PY, :P].set(ys[None, :])
    geom = geom.at[:, _ROW_CLS, :P].set(cls_id)
    geom4 = geom.reshape(B, GEOM_ROWS, s_pad, 128)

    loss = _fcos_loss_pallas(conf4, geom4, tile_s)
    return loss, (conf4, geom4)


def _reference_loss(conf4, geom4):
    """Pure-JAX (non-Pallas) check of the packed-tensor math."""
    B = conf4.shape[0]
    total = jnp.float32(0.0)
    for b in range(B):
        lc, ll, lcen, poses = _loss_terms(conf4[b], geom4[b],
                                          lambda u: 1.0 / u)
        total = total + _combine(lc, ll, lcen, poses)
    return total / B


if __name__ == "__main__":
    key = jax.random.PRNGKey(0)
    B, C = 2, 4
    level_shapes = [(16, 16), (8, 8), (4, 4), (2, 2), (1, 1)]
    strides = [4, 8, 16, 32, 64]   # 64x64 input image implied

    confses, locses, centerses = [], [], []
    for (H, W) in level_shapes:
        key, k1, k2, k3 = jax.random.split(key, 4)
        confses.append(
            jax.random.uniform(k1, (B, C, H, W), jnp.float32, 0.01, 0.99))
        locses.append(
            jax.random.uniform(k2, (B, 4, H, W), jnp.float32, 1.0, 20.0))
        centerses.append(
            jax.random.uniform(k3, (B, 1, H, W), jnp.float32, 0.01, 0.99))

    # labels[b] = GT boxes for image b, rows of [class, x1, y1, x2, y2]
    labels = jnp.array(
        [
            [[0.0, 4.0, 4.0, 28.0, 28.0], [2.0, 30.0, 10.0, 60.0, 50.0]],
            [[1.0, 8.0, 8.0, 40.0, 48.0], [3.0, 20.0, 20.0, 44.0, 60.0]],
        ],
        jnp.float32,
    )

    loss, packed = fcos_loss(
        confses, locses, centerses, labels, level_shapes, strides)
    loss = jax.block_until_ready(loss)

    ref = jax.block_until_ready(_reference_loss(*packed))
    assert jnp.isfinite(loss), "non-finite loss"
    assert jnp.abs(loss - ref) <= 2e-3 * (1.0 + jnp.abs(ref)), (loss, ref)

    print("KERNEL_OK")
</pallas_src>

<mosaic_0001>
module attributes {stable_mosaic.version = 11 : i64} {
  func.func @_fcos_loss_kernel(%arg0: i32, %arg1: i32, %arg2: memref<1x4x3x128xf32, #tpu.memory_space<vmem>>, %arg3: memref<1x16x3x128xf32, #tpu.memory_space<vmem>>, %arg4: memref<1x1x128xf32, #tpu.memory_space<vmem>>, %arg5: memref<1x128xf32, #tpu.memory_space<vmem>>, %arg6: memref<1x128xf32, #tpu.memory_space<vmem>>, %arg7: memref<1x128xf32, #tpu.memory_space<vmem>>, %arg8: memref<1x128xf32, #tpu.memory_space<vmem>>) attributes {dimension_semantics = [#tpu.dimension_semantics<parallel>, #tpu.dimension_semantics<arbitrary>], iteration_bounds = array<i64: 2, 1>, scalar_prefetch = 0 : i64, scratch_operands = 4 : i64, tpu.core_type = #tpu.core_type<tc>, window_params = [{transform_indices = @transform_0, window_bounds = array<i64: 1, 4, 3, 128>}, {transform_indices = @transform_1, window_bounds = array<i64: 1, 16, 3, 128>}, {transform_indices = @transform_2, window_bounds = array<i64: 1, 1, 128>}]} {
    %c0_i32 = arith.constant 0 : i32
    %0 = arith.cmpi eq, %arg1, %c0_i32 : i32
    %1 = arith.extui %0 : i1 to i32
    %c0_i32_0 = arith.constant 0 : i32
    %2 = arith.cmpi ne, %1, %c0_i32_0 : i32
    scf.if %2 {
      %cst_50 = arith.constant 0.000000e+00 : f32
      %158 = vector.broadcast %cst_50 : f32 to vector<1x128xf32>
      %c0_51 = arith.constant 0 : index
      %c0_52 = arith.constant 0 : index
      %159 = vector.load %arg5[%c0_51, %c0_52] : memref<1x128xf32, #tpu.memory_space<vmem>>, vector<1x128xf32>
      tpu.vector_store %arg5[%c0_51, %c0_52], %158 {strides = array<i32>} : memref<1x128xf32, #tpu.memory_space<vmem>>, vector<1x128xf32>,
      %cst_53 = arith.constant 0.000000e+00 : f32
      %160 = vector.broadcast %cst_53 : f32 to vector<1x128xf32>
      %c0_54 = arith.constant 0 : index
      %c0_55 = arith.constant 0 : index
      %161 = vector.load %arg6[%c0_54, %c0_55] : memref<1x128xf32, #tpu.memory_space<vmem>>, vector<1x128xf32>
      tpu.vector_store %arg6[%c0_54, %c0_55], %160 {strides = array<i32>} : memref<1x128xf32, #tpu.memory_space<vmem>>, vector<1x128xf32>,
      %cst_56 = arith.constant 0.000000e+00 : f32
      %162 = vector.broadcast %cst_56 : f32 to vector<1x128xf32>
      %c0_57 = arith.constant 0 : index
      %c0_58 = arith.constant 0 : index
      %163 = vector.load %arg7[%c0_57, %c0_58] : memref<1x128xf32, #tpu.memory_space<vmem>>, vector<1x128xf32>
      tpu.vector_store %arg7[%c0_57, %c0_58], %162 {strides = array<i32>} : memref<1x128xf32, #tpu.memory_space<vmem>>, vector<1x128xf32>,
      %cst_59 = arith.constant 0.000000e+00 : f32
      %164 = vector.broadcast %cst_59 : f32 to vector<1x128xf32>
      %c0_60 = arith.constant 0 : index
      %c0_61 = arith.constant 0 : index
      %165 = vector.load %arg8[%c0_60, %c0_61] : memref<1x128xf32, #tpu.memory_space<vmem>>, vector<1x128xf32>
      tpu.vector_store %arg8[%c0_60, %c0_61], %164 {strides = array<i32>} : memref<1x128xf32, #tpu.memory_space<vmem>>, vector<1x128xf32>,
    } else {
    }
    %c0 = arith.constant 0 : index
    %c0_1 = arith.constant 0 : index
    %c0_2 = arith.constant 0 : index
    %c0_3 = arith.constant 0 : index
    %3 = vector.load %arg2[%c0, %c0_1, %c0_2, %c0_3] : memref<1x4x3x128xf32, #tpu.memory_space<vmem>>, vector<1x4x3x128xf32>
    %4 = vector.shape_cast %3 : vector<1x4x3x128xf32> to vector<4x3x128xf32>
    %c0_4 = arith.constant 0 : index
    %c0_5 = arith.constant 0 : index
    %c0_6 = arith.constant 0 : index
    %c0_7 = arith.constant 0 : index
    %5 = vector.load %arg3[%c0_4, %c0_5, %c0_6, %c0_7] : memref<1x16x3x128xf32, #tpu.memory_space<vmem>>, vector<1x16x3x128xf32>
    %6 = vector.shape_cast %5 : vector<1x16x3x128xf32> to vector<16x3x128xf32>
    %7 = vector.extract_strided_slice %6 {offsets = [0, 0, 0], sizes = [1, 3, 128], strides = [1, 1, 1]} : vector<16x3x128xf32> to vector<1x3x128xf32>
    %8 = vector.shape_cast %7 : vector<1x3x128xf32> to vector<3x128xf32>
    %9 = vector.extract_strided_slice %6 {offsets = [1, 0, 0], sizes = [1, 3, 128], strides = [1, 1, 1]} : vector<16x3x128xf32> to vector<1x3x128xf32>
    %10 = vector.shape_cast %9 : vector<1x3x128xf32> to vector<3x128xf32>
    %11 = vector.extract_strided_slice %6 {offsets = [2, 0, 0], sizes = [1, 3, 128], strides = [1, 1, 1]} : vector<16x3x128xf32> to vector<1x3x128xf32>
    %12 = vector.shape_cast %11 : vector<1x3x128xf32> to vector<3x128xf32>
    %13 = vector.extract_strided_slice %6 {offsets = [3, 0, 0], sizes = [1, 3, 128], strides = [1, 1, 1]} : vector<16x3x128xf32> to vector<1x3x128xf32>
    %14 = vector.shape_cast %13 : vector<1x3x128xf32> to vector<3x128xf32>
    %15 = vector.extract_strided_slice %6 {offsets = [4, 0, 0], sizes = [1, 3, 128], strides = [1, 1, 1]} : vector<16x3x128xf32> to vector<1x3x128xf32>
    %16 = vector.shape_cast %15 : vector<1x3x128xf32> to vector<3x128xf32>
    %17 = vector.extract_strided_slice %6 {offsets = [5, 0, 0], sizes = [1, 3, 128], strides = [1, 1, 1]} : vector<16x3x128xf32> to vector<1x3x128xf32>
    %18 = vector.shape_cast %17 : vector<1x3x128xf32> to vector<3x128xf32>
    %19 = vector.extract_strided_slice %6 {offsets = [6, 0, 0], sizes = [1, 3, 128], strides = [1, 1, 1]} : vector<16x3x128xf32> to vector<1x3x128xf32>
    %20 = vector.shape_cast %19 : vector<1x3x128xf32> to vector<3x128xf32>
    %21 = vector.extract_strided_slice %6 {offsets = [7, 0, 0], sizes = [1, 3, 128], strides = [1, 1, 1]} : vector<16x3x128xf32> to vector<1x3x128xf32>
    %22 = vector.shape_cast %21 : vector<1x3x128xf32> to vector<3x128xf32>
    %23 = vector.extract_strided_slice %6 {offsets = [8, 0, 0], sizes = [1, 3, 128], strides = [1, 1, 1]} : vector<16x3x128xf32> to vector<1x3x128xf32>
    %24 = vector.shape_cast %23 : vector<1x3x128xf32> to vector<3x128xf32>
    %25 = vector.extract_strided_slice %6 {offsets = [9, 0, 0], sizes = [1, 3, 128], strides = [1, 1, 1]} : vector<16x3x128xf32> to vector<1x3x128xf32>
    %26 = vector.shape_cast %25 : vector<1x3x128xf32> to vector<3x128xf32>
    %27 = vector.extract_strided_slice %6 {offsets = [10, 0, 0], sizes = [1, 3, 128], strides = [1, 1, 1]} : vector<16x3x128xf32> to vector<1x3x128xf32>
    %28 = vector.shape_cast %27 : vector<1x3x128xf32> to vector<3x128xf32>
    %29 = vector.extract_strided_slice %6 {offsets = [11, 0, 0], sizes = [1, 3, 128], strides = [1, 1, 1]} : vector<16x3x128xf32> to vector<1x3x128xf32>
    %30 = vector.shape_cast %29 : vector<1x3x128xf32> to vector<3x128xf32>
    %31 = vector.extract_strided_slice %6 {offsets = [12, 0, 0], sizes = [1, 3, 128], strides = [1, 1, 1]} : vector<16x3x128xf32> to vector<1x3x128xf32>
    %32 = vector.shape_cast %31 : vector<1x3x128xf32> to vector<3x128xf32>
    %33 = vector.extract_strided_slice %6 {offsets = [13, 0, 0], sizes = [1, 3, 128], strides = [1, 1, 1]} : vector<16x3x128xf32> to vector<1x3x128xf32>
    %34 = vector.shape_cast %33 : vector<1x3x128xf32> to vector<3x128xf32>
    %35 = vector.extract_strided_slice %6 {offsets = [14, 0, 0], sizes = [1, 3, 128], strides = [1, 1, 1]} : vector<16x3x128xf32> to vector<1x3x128xf32>
    %36 = vector.shape_cast %35 : vector<1x3x128xf32> to vector<3x128xf32>
    %37 = arith.fptosi %36 : vector<3x128xf32> to vector<3x128xi32>
    %cst = arith.constant 9.99999993E-9 : f32
    %cst_8 = arith.constant 0.999998986 : f32
    %38 = vector.broadcast %cst : f32 to vector<4x3x128xf32>
    %39 = arith.maximumf %38, %4 : vector<4x3x128xf32>
    %40 = vector.broadcast %cst_8 : f32 to vector<4x3x128xf32>
    %41 = arith.minimumf %40, %39 : vector<4x3x128xf32>
    %42 = tpu.iota {dimensions = array<i32: 0>} : vector<4x3x128xi32>
    %43 = vector.shape_cast %37 : vector<3x128xi32> to vector<1x3x128xi32>
    %44 = vector.broadcast %43 : vector<1x3x128xi32> to vector<4x3x128xi32>
    %45 = arith.cmpi eq, %42, %44 : vector<4x3x128xi32>
    %46 = vector.shape_cast %28 : vector<3x128xf32> to vector<1x3x128xf32>
    %cst_9 = arith.constant 5.000000e-01 : f32
    %47 = vector.broadcast %cst_9 : f32 to vector<1x3x128xf32>
    %48 = arith.cmpf ogt, %46, %47 : vector<1x3x128xf32>
    %49 = vector.broadcast %48 : vector<1x3x128xi1> to vector<4x3x128xi1>
    %50 = arith.andi %45, %49 : vector<4x3x128xi1>
    %cst_10 = arith.constant 1.000000e+00 : f32
    %51 = vector.broadcast %cst_10 : f32 to vector<4x3x128xf32>
    %52 = arith.subf %51, %41 : vector<4x3x128xf32>
    %53 = arith.select %50, %41, %52 : vector<4x3x128xi1>, vector<4x3x128xf32>
    %cst_11 = arith.constant 2.500000e-01 : f32
    %cst_12 = arith.constant 7.500000e-01 : f32
    %54 = vector.broadcast %cst_11 : f32 to vector<4x3x128xf32>
    %55 = vector.broadcast %cst_12 : f32 to vector<4x3x128xf32>
    %56 = arith.select %50, %54, %55 : vector<4x3x128xi1>, vector<4x3x128xf32>
    %cst_13 = arith.constant 1.000000e+00 : f32
    %57 = vector.broadcast %cst_13 : f32 to vector<4x3x128xf32>
    %58 = arith.subf %57, %53 : vector<4x3x128xf32>
    %59 = arith.mulf %58, %58 : vector<4x3x128xf32>
    %60 = arith.mulf %56, %59 : vector<4x3x128xf32>
    %61 = math.log %53 : vector<4x3x128xf32>
    %62 = arith.mulf %60, %61 : vector<4x3x128xf32>
    %cst_14 = arith.constant 0.000000e+00 : f32
    %63 = vector.broadcast %cst_14 : f32 to vector<4x3x128xf32>
    %64 = arith.subf %63, %62 : vector<4x3x128xf32>
    %65 = vector.shape_cast %30 : vector<3x128xf32> to vector<1x3x128xf32>
    %66 = vector.broadcast %65 : vector<1x3x128xf32> to vector<4x3x128xf32>
    %67 = arith.mulf %64, %66 : vector<4x3x128xf32>
    %68 = vector.shape_cast %67 : vector<4x3x128xf32> to vector<1x4x3x128xf32>
    %cst_15 = arith.constant dense<0.000000e+00> : vector<1xf32>
    %69 = vector.multi_reduction <add>, %68, %cst_15 [1, 2, 3] : vector<1x4x3x128xf32> to vector<1xf32>
    %70 = vector.shape_cast %69 : vector<1xf32> to vector<1x1x1x1xf32>
    %71 = vector.extract %70[0, 0, 0, 0] : f32 from vector<1x1x1x1xf32>
    %72 = arith.subf %32, %8 : vector<3x128xf32>
    %73 = arith.subf %34, %10 : vector<3x128xf32>
    %74 = arith.addf %32, %12 : vector<3x128xf32>
    %75 = arith.addf %34, %14 : vector<3x128xf32>
    %76 = arith.minimumf %74, %20 : vector<3x128xf32>
    %77 = arith.maximumf %72, %16 : vector<3x128xf32>
    %78 = arith.subf %76, %77 : vector<3x128xf32>
    %cst_16 = arith.constant 0.000000e+00 : f32
    %79 = vector.broadcast %cst_16 : f32 to vector<3x128xf32>
    %80 = arith.maximumf %78, %79 : vector<3x128xf32>
    %81 = arith.minimumf %75, %22 : vector<3x128xf32>
    %82 = arith.maximumf %73, %18 : vector<3x128xf32>
    %83 = arith.subf %81, %82 : vector<3x128xf32>
    %cst_17 = arith.constant 0.000000e+00 : f32
    %84 = vector.broadcast %cst_17 : f32 to vector<3x128xf32>
    %85 = arith.maximumf %83, %84 : vector<3x128xf32>
    %86 = arith.mulf %80, %85 : vector<3x128xf32>
    %87 = arith.subf %74, %72 : vector<3x128xf32>
    %cst_18 = arith.constant 0.000000e+00 : f32
    %88 = vector.broadcast %cst_18 : f32 to vector<3x128xf32>
    %89 = arith.maximumf %87, %88 : vector<3x128xf32>
    %90 = arith.subf %75, %73 : vector<3x128xf32>
    %cst_19 = arith.constant 0.000000e+00 : f32
    %91 = vector.broadcast %cst_19 : f32 to vector<3x128xf32>
    %92 = arith.maximumf %90, %91 : vector<3x128xf32>
    %93 = arith.mulf %89, %92 : vector<3x128xf32>
    %94 = arith.subf %20, %16 : vector<3x128xf32>
    %95 = arith.subf %22, %18 : vector<3x128xf32>
    %96 = arith.mulf %94, %95 : vector<3x128xf32>
    %97 = arith.addf %93, %96 : vector<3x128xf32>
    %98 = arith.subf %97, %86 : vector<3x128xf32>
    %cst_20 = arith.constant 9.99999993E-9 : f32
    %99 = vector.broadcast %cst_20 : f32 to vector<3x128xf32>
    %100 = arith.maximumf %98, %99 : vector<3x128xf32>
    %101 = tpu.reciprocal %100 {approx = true} : vector<3x128xf32> -> vector<3x128xf32>
    %102 = arith.mulf %86, %101 : vector<3x128xf32>
    %cst_21 = arith.constant 9.99999993E-9 : f32
    %cst_22 = arith.constant 1.000000e+00 : f32
    %103 = vector.broadcast %cst_21 : f32 to vector<3x128xf32>
    %104 = arith.maximumf %103, %102 : vector<3x128xf32>
    %105 = vector.broadcast %cst_22 : f32 to vector<3x128xf32>
    %106 = arith.minimumf %105, %104 : vector<3x128xf32>
    %107 = math.log %106 : vector<3x128xf32>
    %cst_23 = arith.constant 0.000000e+00 : f32
    %108 = vector.broadcast %cst_23 : f32 to vector<3x128xf32>
    %109 = arith.subf %108, %107 : vector<3x128xf32>
    %110 = arith.mulf %109, %28 : vector<3x128xf32>
    %111 = vector.shape_cast %110 : vector<3x128xf32> to vector<1x3x128xf32>
    %cst_24 = arith.constant dense<0.000000e+00> : vector<1xf32>
    %112 = vector.multi_reduction <add>, %111, %cst_24 [1, 2] : vector<1x3x128xf32> to vector<1xf32>
    %113 = vector.shape_cast %112 : vector<1xf32> to vector<1x1x1xf32>
    %114 = vector.extract %113[0, 0, 0] : f32 from vector<1x1x1xf32>
    %cst_25 = arith.constant 9.99999993E-9 : f32
    %cst_26 = arith.constant 1.000000e+00 : f32
    %115 = vector.broadcast %cst_25 : f32 to vector<3x128xf32>
    %116 = arith.maximumf %115, %24 : vector<3x128xf32>
    %117 = vector.broadcast %cst_26 : f32 to vector<3x128xf32>
    %118 = arith.minimumf %117, %116 : vector<3x128xf32>
    %119 = math.log %118 : vector<3x128xf32>
    %120 = arith.mulf %26, %119 : vector<3x128xf32>
    %cst_27 = arith.constant 1.000000e+00 : f32
    %121 = vector.broadcast %cst_27 : f32 to vector<3x128xf32>
    %122 = arith.subf %121, %26 : vector<3x128xf32>
    %cst_28 = arith.constant 1.000000e+00 : f32
    %123 = vector.broadcast %cst_28 : f32 to vector<3x128xf32>
    %124 = arith.subf %123, %118 : vector<3x128xf32>
    %125 = math.log %124 : vector<3x128xf32>
    %126 = arith.mulf %122, %125 : vector<3x128xf32>
    %127 = arith.addf %120, %126 : vector<3x128xf32>
    %cst_29 = arith.constant 0.000000e+00 : f32
    %128 = vector.broadcast %cst_29 : f32 to vector<3x128xf32>
    %129 = arith.subf %128, %127 : vector<3x128xf32>
    %130 = arith.mulf %129, %28 : vector<3x128xf32>
    %131 = vector.shape_cast %130 : vector<3x128xf32> to vector<1x3x128xf32>
    %cst_30 = arith.constant dense<0.000000e+00> : vector<1xf32>
    %132 = vector.multi_reduction <add>, %131, %cst_30 [1, 2] : vector<1x3x128xf32> to vector<1xf32>
    %133 = vector.shape_cast %132 : vector<1xf32> to vector<1x1x1xf32>
    %134 = vector.extract %133[0, 0, 0] : f32 from vector<1x1x1xf32>
    %135 = vector.shape_cast %28 : vector<3x128xf32> to vector<1x3x128xf32>
    %cst_31 = arith.constant dense<0.000000e+00> : vector<1xf32>
    %136 = vector.multi_reduction <add>, %135, %cst_31 [1, 2] : vector<1x3x128xf32> to vector<1xf32>
    %137 = vector.shape_cast %136 : vector<1xf32> to vector<1x1x1xf32>
    %138 = vector.extract %137[0, 0, 0] : f32 from vector<1x1x1xf32>
    %c0_32 = arith.constant 0 : index
    %c0_33 = arith.constant 0 : index
    %139 = vector.load %arg5[%c0_32, %c0_33] : memref<1x128xf32, #tpu.memory_space<vmem>>, vector<1x128xf32>
    %140 = vector.broadcast %71 : f32 to vector<1x128xf32>
    %141 = arith.addf %139, %140 : vector<1x128xf32>
    %c0_34 = arith.constant 0 : index
    %c0_35 = arith.constant 0 : index
    %142 = vector.load %arg5[%c0_34, %c0_35] : memref<1x128xf32, #tpu.memory_space<vmem>>, vector<1x128xf32>
    tpu.vector_store %arg5[%c0_34, %c0_35], %141 {strides = array<i32>} : memref<1x128xf32, #tpu.memory_space<vmem>>, vector<1x128xf32>,
    %c0_36 = arith.constant 0 : index
    %c0_37 = arith.constant 0 : index
    %143 = vector.load %arg6[%c0_36, %c0_37] : memref<1x128xf32, #tpu.memory_space<vmem>>, vector<1x128xf32>
    %144 = vector.broadcast %114 : f32 to vector<1x128xf32>
    %145 = arith.addf %143, %144 : vector<1x128xf32>
    %c0_38 = arith.constant 0 : index
    %c0_39 = arith.constant 0 : index
    %146 = vector.load %arg6[%c0_38, %c0_39] : memref<1x128xf32, #tpu.memory_space<vmem>>, vector<1x128xf32>
    tpu.vector_store %arg6[%c0_38, %c0_39], %145 {strides = array<i32>} : memref<1x128xf32, #tpu.memory_space<vmem>>, vector<1x128xf32>,
    %c0_40 = arith.constant 0 : index
    %c0_41 = arith.constant 0 : index
    %147 = vector.load %arg7[%c0_40, %c0_41] : memref<1x128xf32, #tpu.memory_space<vmem>>, vector<1x128xf32>
    %148 = vector.broadcast %134 : f32 to vector<1x128xf32>
    %149 = arith.addf %147, %148 : vector<1x128xf32>
    %c0_42 = arith.constant 0 : index
    %c0_43 = arith.constant 0 : index
    %150 = vector.load %arg7[%c0_42, %c0_43] : memref<1x128xf32, #tpu.memory_space<vmem>>, vector<1x128xf32>
    tpu.vector_store %arg7[%c0_42, %c0_43], %149 {strides = array<i32>} : memref<1x128xf32, #tpu.memory_space<vmem>>, vector<1x128xf32>,
    %c0_44 = arith.constant 0 : index
    %c0_45 = arith.constant 0 : index
    %151 = vector.load %arg8[%c0_44, %c0_45] : memref<1x128xf32, #tpu.memory_space<vmem>>, vector<1x128xf32>
    %152 = vector.broadcast %138 : f32 to vector<1x128xf32>
    %153 = arith.addf %151, %152 : vector<1x128xf32>
    %c0_46 = arith.constant 0 : index
    %c0_47 = arith.constant 0 : index
    %154 = vector.load %arg8[%c0_46, %c0_47] : memref<1x128xf32, #tpu.memory_space<vmem>>, vector<1x128xf32>
    tpu.vector_store %arg8[%c0_46, %c0_47], %153 {strides = array<i32>} : memref<1x128xf32, #tpu.memory_space<vmem>>, vector<1x128xf32>,
    %c0_i32_48 = arith.constant 0 : i32
    %155 = arith.cmpi eq, %arg1, %c0_i32_48 : i32
    %156 = arith.extui %155 : i1 to i32
    %c0_i32_49 = arith.constant 0 : i32
    %157 = arith.cmpi ne, %156, %c0_i32_49 : i32
    scf.if %157 {
      %c0_50 = arith.constant 0 : index
      %c0_51 = arith.constant 0 : index
      %158 = vector.load %arg5[%c0_50, %c0_51] : memref<1x128xf32, #tpu.memory_space<vmem>>, vector<1x128xf32>
      %c0_52 = arith.constant 0 : index
      %c0_53 = arith.constant 0 : index
      %159 = vector.load %arg6[%c0_52, %c0_53] : memref<1x128xf32, #tpu.memory_space<vmem>>, vector<1x128xf32>
      %c0_54 = arith.constant 0 : index
      %c0_55 = arith.constant 0 : index
      %160 = vector.load %arg7[%c0_54, %c0_55] : memref<1x128xf32, #tpu.memory_space<vmem>>, vector<1x128xf32>
      %c0_56 = arith.constant 0 : index
      %c0_57 = arith.constant 0 : index
      %161 = vector.load %arg8[%c0_56, %c0_57] : memref<1x128xf32, #tpu.memory_space<vmem>>, vector<1x128xf32>
      %cst_58 = arith.constant 0.000000e+00 : f32
      %162 = vector.broadcast %cst_58 : f32 to vector<1x128xf32>
      %163 = arith.cmpf ogt, %161, %162 : vector<1x128xf32>
      %164 = arith.addf %158, %159 : vector<1x128xf32>
      %cst_59 = arith.constant 1.000000e+00 : f32
      %165 = vector.broadcast %cst_59 : f32 to vector<1x128xf32>
      %166 = arith.maximumf %161, %165 : vector<1x128xf32>
      %167 = arith.divf %164, %166 : vector<1x128xf32>
      %168 = arith.addf %160, %167 : vector<1x128xf32>
      %169 = arith.addf %160, %158 : vector<1x128xf32>
      %170 = arith.addf %169, %159 : vector<1x128xf32>
      %171 = arith.select %163, %168, %170 : vector<1x128xi1>, vector<1x128xf32>
      %172 = vector.shape_cast %171 : vector<1x128xf32> to vector<1x1x128xf32>
      %c0_60 = arith.constant 0 : index
      %c0_61 = arith.constant 0 : index
      %c0_62 = arith.constant 0 : index
      %173 = vector.load %arg4[%c0_60, %c0_61, %c0_62] : memref<1x1x128xf32, #tpu.memory_space<vmem>>, vector<1x1x128xf32>
      tpu.vector_store %arg4[%c0_60, %c0_61, %c0_62], %172 {strides = array<i32>} : memref<1x1x128xf32, #tpu.memory_space<vmem>>, vector<1x1x128xf32>,
    } else {
    }
    return
  }
  func.func @transform_0(%arg0: i32, %arg1: i32) -> (i32, i32, i32, i32) {
    %c0_i32 = arith.constant 0 : i32
    %c0_i32_0 = arith.constant 0 : i32
    %c0_i32_1 = arith.constant 0 : i32
    return %arg0, %c0_i32, %arg1, %c0_i32_0 : i32, i32, i32, i32
  }
  func.func @transform_1(%arg0: i32, %arg1: i32) -> (i32, i32, i32, i32) {
    %c0_i32 = arith.constant 0 : i32
    %c0_i32_0 = arith.constant 0 : i32
    %c0_i32_1 = arith.constant 0 : i32
    return %arg0, %c0_i32, %arg1, %c0_i32_0 : i32, i32, i32, i32
  }
  func.func @transform_2(%arg0: i32, %arg1: i32) -> (i32, i32, i32) {
    %c0_i32 = arith.constant 0 : i32
    %c0_i32_0 = arith.constant 0 : i32
    %c0_i32_1 = arith.constant 0 : i32
    return %arg0, %c0_i32, %c0_i32_0 : i32, i32, i32
  }
}

</mosaic_0001>

<bundles_post_ra>
// kernel: tpu_custom_call.1
= control target key start
LH: loop header
LB: loop body
LE: loop exit
PB: predicated region body
PF: predicated region fallthrough
CT: control target
= control target key end

     0   :  { %7 = vsyncpa [#allocation7], 0  ;;  %s861_s0 = inlined_call_operand.vmem [shape: f32[2,4,3,128], index: 0, kind: input, shape index: {}]   ;;  %s862_s1 = inlined_call_operand.vmem [shape: f32[2,16,3,128], index: 1, kind: input, shape index: {}]   ;;  %s863_s2 = inlined_call_operand.hbm [shape: f32[2,1,128], index: 2, kind: output, shape index: {}]  }
   0x1   :  { %9 = vsyncpa [#allocation7 + $0x1], 0  ;;  %s722_s9 = smov 0   ;;  %s724_s10 = smov 0  }
   0x2   :  { %s726_s11 = smov 0   ;;  %s728_s12 = smov 0  }
   0x3   :  { %s730_s13 = smov 0   ;;  %s732_s14 = smov 0  }
   0x4 LB: > { %s524_s15 = sadd.s32 4294967295, %s703_s14   ;;  %s525_s16 = sadd.s32 4294967294, %s703_s14   ;;  %s703_s14 = sphi %s732_s14, %s15_s14   ;;  %s699_s13 = sphi %s730_s13, %s870_s13   ;;  %s695_s12 = sphi %s728_s12, %s869_s12   ;;  %s691_s11 = sphi %s726_s11, %s868_s11   ;;  %s687_s10 = sphi %s724_s10, %s867_s10   ;;  %s683_s9 = sphi %s722_s9, %s866_s9  }
   0x5   : > { %s27_s17 = sadd.s32 1, %s699_s13  ;;  %s90_s18 = sadd.s32 1, %s691_s11 }
   0x6   : > { %p29_p0 = scmp.ge.s32.totalorder %s27_s17, 2  ;;  %p100_p1 = scmp.ne.s32.totalorder %s691_s11, %s687_s10 }
   0x7   : > { %p101_p2 = scmp.eq.s32.totalorder %s524_s15, 1  ;;  %p106_p3 = scmp.ne.s32.totalorder %s687_s10, %s683_s9 }
   0x8   : > { %s872_s17 = smov (%p29_p0, %s27_s17), 0  ;;  %p107_p5 = scmp.eq.s32.totalorder %s525_s16, 1 }
   0x9   : > { %p762_p4 = por %p101_p2, %p100_p1  ;;  %s87_s20 = ssub.s32 %s699_s13, %s872_s17 }
   0xa   : > { %p528_p6 = scmp.ge.s32.totalorder %s703_s14, 1  ;;  %p88_p7 = scmp.eq.s32.totalorder %s87_s20, 0 }
   0xb   : > { %p769_p8 = por %p107_p5, %p106_p3  ;;  %p147_p9 = scmp.lt.s32.totalorder %s703_s14, 3 }
   0xc   : > { %s775_s22 = scalar_select %p88_p7, %s691_s11, %s90_s18  }
   0xd   : > { %p148_p10 = pnand %p528_p6, %p147_p9 }
   0xe   : > { %p179_p11 = scmp.lt.s32.totalorder (!%p148_p10), %s695_s12, 1  ;;  %s177_s8 = sand.u32 (!%p148_p10), 1, %s687_s10  }
   0xf   : > { %151 = sbr.rel (%p148_p10) target bundleno = 300 (0x12c), region = 28  ;;  %s433_s18 = scalar_lea.hbm (!%p148_p10), %s863_s2, %s695_s12 }
  0x10   : > { %s178_s20 = scalar_lea.vmem (!%p148_p10), [#allocation6], %s177_s8  ;;  %s645_s29 = scalar_lea.hbm (!%p148_p10), %s863_s2, 2 }
  0x14   : > { %s180_s23 = scalar_select %p179_p11, %s695_s12, 1  ;;  %v705_v30 = vmov 0.75   ;;  %vm286_vm10 = vcmask 1042432  }
  0x16   : > { %s536_s24 = sshll.u32 %s180_s23, 6  ;;  %s535_s25 = sshll.u32 %s180_s23, 4 }
  0x17   : > { %s782_s28 = scalar_lea.vmem %s862_s1, %s536_s24  ;;  %s186_s3 = scalar_lea.vmem %s861_s0, %s535_s25 }
  0x18   : > { %v215_v0 = vld [vmem:[%s782_s28 + $0x20] sm:$0x7]  ;;  %v789_v3 = vld [vmem:[%s782_s28 + $0x28] sm:$0x7]  ;;  %v204_v4 = vld [vmem:[%s186_s3 + $0x4] sm:$0x7] }
  0x19   : > { %v345_v1 = vmax.f32 %v215_v0, 1e-08  ;;  %v203_v2 = vld [vmem:[%s186_s3] sm:$0x7]  ;;  %v205_v5 = vld [vmem:[%s186_s3 + $0x8] sm:$0x7] }
  0x1a   : > { %v206_v7 = vld [vmem:[%s186_s3 + $0xc] sm:$0x7]  ;;  %v221_v8 = vld [vmem:[%s782_s28 + $0x38] sm:$0x7]  ;;  %v223_v11 = vmax.f32 %v203_v2, 1e-08 }
  0x1b   : > { %v346_v6 = vmin.f32 %v345_v1, 1.0  ;;  %vm537_vm0 = vcmp.lt.s32.totalorder %v221_v8, 0  ;;  %v538_v9 = vceil.f32 %v221_v8  ;;  %v539_v10 = vfloor.f32 %v221_v8  ;;  %v216_v21 = vld [vmem:[%s782_s28 + $0x24] sm:$0x7]  ;;  %v207_v32 = vld [vmem:[%s782_s28] sm:$0x7] }
  0x1c   : > { %v224_v13 = vmax.f32 %v204_v4, 1e-08  ;;  %v225_v14 = vmax.f32 %v205_v5, 1e-08  ;;  %vm235_vm1 = vcmp.gt.f32.partialorder %v789_v3, 0.5  ;;  %v350_v28 = vsub.f32 1.0, %v216_v21 }
  0x1d   : > { %607 = vlog2.f32 %v346_v6  ;;  %v351_v12 = vsub.f32 1.0, %v346_v6  ;;  %v540_v15 = vsel %vm537_vm0, %v538_v9, %v539_v10  ;;  %v226_v16 = vmax.f32 %v206_v7, 1e-08  ;;  %v208_v37 = vld [vmem:[%s782_s28 + $0x4] sm:$0x7]  ;;  %s435_s23 = sshll.u32 %s178_s20, 4  ;;  %s436_s23 = int_to_ptr.vmem [resolvable:$true] %s435_s23 }
  0x1e   : > { %v227_v17 = vmin.f32 %v223_v11, 0.999999  ;;  %v541_v18 = vcvt.f32.s32 %v540_v15  ;;  %v228_v19 = vmin.f32 %v224_v13, 0.999999  ;;  %v229_v20 = vmin.f32 %v225_v14, 0.999999 }
  0x1f   : > { %609 = vlog2.f32 %v351_v12  ;;  %v230_v22 = vmin.f32 %v226_v16, 0.999999  ;;  %v219_v42 = vld [vmem:[%s782_s28 + $0x30] sm:$0x7]  ;;  %v220_v43 = vld [vmem:[%s782_s28 + $0x34] sm:$0x7] }
  0x20   : > { %v242_v23 = vsub.f32 1.0, %v227_v17  ;;  %vm231_vm2 = vcmp.eq.s32.totalorder %v541_v18, 0  ;;  %vm232_vm3 = vcmp.eq.s32.totalorder %v541_v18, 1  ;;  %vm233_vm4 = vcmp.eq.s32.totalorder %v541_v18, 2  ;;  %v209_v52 = vld [vmem:[%s782_s28 + $0x8] sm:$0x7] }
  0x21   : > { %vm234_vm5 = vcmp.eq.s32.totalorder %v541_v18, 3  ;;  %vm238_vm6 = vmand %vm231_vm2, %vm235_vm1  ;;  %v243_v24 = vsub.f32 1.0, %v228_v19  ;;  %v244_v25 = vsub.f32 1.0, %v229_v20  ;;  %v245_v26 = vsub.f32 1.0, %v230_v22  ;;  %v210_v53 = vld [vmem:[%s782_s28 + $0xc] sm:$0x7] }
  0x22   : > { %vm239_vm7 = vmand %vm232_vm3, %vm235_vm1  ;;  %v246_v29 = vsel %vm238_vm6, %v227_v17, %v242_v23  ;;  %v250_v31 = vsel %vm238_vm6, 0.25, %v705_v30  ;;  %v211_v55 = vld [vmem:[%s782_s28 + $0x10] sm:$0x7]  ;;  %v303_v56 = vsub.f32 %v219_v42, %v207_v32  ;;  %v304_v57 = vsub.f32 %v220_v43, %v208_v37  ;;  %v213_v62 = vld [vmem:[%s782_s28 + $0x18] sm:$0x7]  ;;  %s437_s24 = sshll.u32 %s433_s18, 4  ;;  %s438_s24 = int_to_ptr.hbm [resolvable:$true] %s437_s24 }
  0x23   : > { %v608_v27 = vpop.eup %607  ;;  %vm240_vm8 = vmand %vm233_vm4, %vm235_vm1  ;;  %v247_v34 = vsel %vm239_vm7, %v228_v19, %v243_v24  ;;  %v251_v35 = vsel %vm239_vm7, 0.25, %v705_v30  ;;  %v254_v36 = vsub.f32 1.0, %v246_v29  ;;  %611 = vlog2.f32 %v246_v29  ;;  %v214_v63 = vld [vmem:[%s782_s28 + $0x1c] sm:$0x7]  ;;  %v212_v1 = vld [vmem:[%s782_s28 + $0x14] sm:$0x7] }
  0x24   : > { %v348_v33 = vmul.f32 0.6931472, %v608_v27  ;;  %vm241_vm9 = vmand %vm234_vm5, %vm235_vm1  ;;  %v248_v39 = vsel %vm240_vm8, %v229_v20, %v244_v25  ;;  %v252_v40 = vsel %vm240_vm8, 0.25, %v705_v30  ;;  %v255_v41 = vsub.f32 1.0, %v247_v34  ;;  %s425_s25 = scalar_lea.sflag [#allocation7], %s177_s8  ;;  %s639_s26 = sshra.s32 %s438_s24, 4  ;;  %s640_s26 = int_to_ptr.hbm [resolvable:$true] %s639_s26 }
  0x25   : > { %v610_v38 = vpop.eup %609  ;;  %v249_v46 = vsel %vm241_vm9, %v230_v22, %v245_v26  ;;  %v253_v47 = vsel %vm241_vm9, 0.25, %v705_v30  ;;  %v256_v48 = vsub.f32 1.0, %v248_v39  ;;  %v258_v50 = vmul.f32 %v254_v36, %v254_v36  ;;  %v218_v22 = vld [vmem:[%s782_s28 + $0x2c] sm:$0x7]  ;;  %s641_s12 = scalar_lea.hbm %s640_s26, 1  ;;  %p646_p1 = scmp.lt.s32.totalorder %s640_s26, %s863_s2 }
  0x26   : > { %v349_v44 = vmul.f32 %v348_v33, %v216_v21  ;;  %v353_v45 = vmul.f32 0.6931472, %v610_v38  ;;  %v257_v49 = vsub.f32 1.0, %v249_v46  ;;  %v259_v51 = vmul.f32 %v255_v41, %v255_v41  ;;  %p642_p12 = scmp.ne.s32.totalorder %s640_s26, %s641_s12  ;;  %p647_p2 = scmp.lt.s32.totalorder %s645_s29, %s641_s12 }
  0x27   : > { %613 = vlog2.f32 %v247_v34  ;;  %v260_v58 = vmul.f32 %v256_v48, %v256_v48  ;;  %v262_v60 = vmul.f32 %v258_v50, %v250_v31  ;;  %v305_v2 = vadd.f32 %v219_v42, %v209_v52 }
  0x28   : > { %v354_v54 = vmul.f32 %v353_v45, %v350_v28  ;;  %v261_v59 = vmul.f32 %v257_v49, %v257_v49  ;;  %v263_v61 = vmul.f32 %v259_v51, %v251_v35  ;;  %615 = vlog2.f32 %v248_v39  ;;  %p643_p13 = pnand %p642_p12, %p762_p4  ;;  %p648_p3 = por %p647_p2, %p646_p1 }
  0x29   : > { %v306_v4 = vadd.f32 %v220_v43, %v210_v53  ;;  %v612_v5 = vpop.eup %611  ;;  %v264_v6 = vmul.f32 %v260_v58, %v252_v40  ;;  %617 = vlog2.f32 %v249_v46  ;;  %v308_v8 = vmax.f32 %v303_v56, %v211_v55 }
  0x2a   : > { %v355_v0 = vadd.f32 %v354_v54, %v349_v44  ;;  %v265_v7 = vmul.f32 %v261_v59, %v253_v47  ;;  %v267_v10 = vmul.f32 0.6931472, %v612_v5  ;;  %v307_v11 = vmin.f32 %v305_v2, %v213_v62  ;;  %p644_p0 = pneg %p643_p13 }
  0x2b   : > { %v311_v12 = vmin.f32 %v306_v4, %v214_v63  ;;  %v312_v13 = vmax.f32 %v304_v57, %v212_v1  ;;  %v316_v14 = vsub.f32 %v305_v2, %v303_v56  ;;  %v318_v15 = vsub.f32 %v306_v4, %v304_v57 }
  0x2c   : > { %v356_v9 = vsub.f32 0.0, %v355_v0  ;;  %v321_v16 = vsub.f32 %v213_v62, %v211_v55  ;;  %v274_v19 = vmul.f32 %v267_v10, %v262_v60  ;;  %v309_v20 = vsub.f32 %v307_v11, %v308_v8  ;;  %p649_p5 = pnand %p648_p3, %p644_p0 }
  0x2d   : > { %v614_v17 = vpop.eup %613  ;;  %v322_v21 = vsub.f32 %v214_v63, %v212_v1  ;;  %v313_v24 = vsub.f32 %v311_v12, %v312_v13  ;;  %v317_v25 = vmax.f32 %v316_v14, 0.0  ;;  %v319_v26 = vmax.f32 %v318_v15, 0.0 }
  0x2e   : > { %v357_v18 = vmul.f32 %v356_v9, %v789_v3  ;;  %v269_v23 = vmul.f32 0.6931472, %v614_v17  ;;  %v616_v27 = vpop.eup %615  ;;  %v278_v29 = vsub.f32 0.0, %v274_v19  ;;  %v310_v30 = vmax.f32 %v309_v20, 0.0 }
  0x2f   : > { %v323_v31 = vmul.f32 %v322_v21, %v321_v16  ;;  %v618_v32 = vpop.eup %617  ;;  %v271_v33 = vmul.f32 0.6931472, %v616_v27  ;;  %v314_v35 = vmax.f32 %v313_v24, 0.0  ;;  %v320_v36 = vmul.f32 %v319_v26, %v317_v25 }
  0x30   : > { %v358_v28 = vsel %vm286_vm10, %v357_v18, 0.0  ;;  %v275_v34 = vmul.f32 %v269_v23, %v263_v61  ;;  %v273_v37 = vmul.f32 0.6931472, %v618_v32  ;;  %v282_v38 = vmul.f32 %v278_v29, %v218_v22 }
  0x31   : > { %359 = vadd.xlane.f32.xlu1 %v358_v28  ;;  %v276_v39 = vmul.f32 %v271_v33, %v264_v6  ;;  %v315_v41 = vmul.f32 %v314_v35, %v310_v30  ;;  %v324_v42 = vadd.f32 %v323_v31, %v320_v36  ;;  %v368_v49 = vsel %vm286_vm10, %v789_v3, 0.0 }
  0x32   : > { %v279_v40 = vsub.f32 0.0, %v275_v34  ;;  %v277_v43 = vmul.f32 %v273_v37, %v265_v7  ;;  %v287_v46 = vsel %vm286_vm10, %v282_v38, 0.0  ;;  %v706_v10 = vmov 0.0  }
  0x33   : > { %v280_v44 = vsub.f32 0.0, %v276_v39  ;;  %v325_v47 = vsub.f32 %v324_v42, %v315_v41  ;;  %199 = vst [vmem:[#allocation2] sm:$0x1] %v706_v10 }
  0x34   : > { %v283_v45 = vmul.f32 %v279_v40, %v218_v22  ;;  %v281_v48 = vsub.f32 0.0, %v277_v43  ;;  %200 = vst [vmem:[#allocation3] sm:$0x1] %v706_v10 }
  0x35   : > { %v284_v50 = vmul.f32 %v280_v44, %v218_v22  ;;  %v326_v52 = vmax.f32 %v325_v47, 1e-08  ;;  %201 = vst [vmem:[#allocation4] sm:$0x1] %v706_v10 }
  0x36   : > { %v288_v51 = vsel %vm286_vm10, %v283_v45, 0.0  ;;  %v285_v53 = vmul.f32 %v281_v48, %v218_v22  ;;  %202 = vst [vmem:[#allocation5] sm:$0x1] %v706_v10 }
  0x37   : > { %v289_v54 = vadd.f32 %v288_v51, %v287_v46  ;;  %v290_v55 = vsel %vm286_vm10, %v284_v50, 0.0  ;;  %619 = vrcp.f32 %v326_v52 }
  0x38   : > { %v292_v57 = vsel %vm286_vm10, %v285_v53, 0.0 }
  0x39   : > { %369 = vadd.xlane.f32.xlu1 %v368_v49  ;;  %v291_v56 = vadd.f32 %v290_v55, %v289_v54 }
  0x3a   : > { %v378_v33 = vld [vmem:[#allocation2] sm:$0x1] }
  0x3b   : > { %v293_v58 = vadd.f32 %v292_v57, %v291_v56  ;;  %v382_v36 = vld [vmem:[#allocation3] sm:$0x1] }
  0x3c   : > { %v386_v37 = vld [vmem:[#allocation4] sm:$0x1] }
  0x3d   : > { %294 = vadd.xlane.f32.xlu0 %v293_v58  ;;  %v620_v59 = vpop.eup %619  ;;  %v390_v39 = vld [vmem:[#allocation5] sm:$0x1] }
  0x3e   : > { %v328_v60 = vmul.f32 %v620_v59, %v315_v41 }
  0x40   : > { %v329_v61 = vmax.f32 %v328_v60, 1e-08 }
  0x42   : > { %v330_v62 = vmin.f32 %v329_v61, 1.0 }
  0x44   : > { %621 = vlog2.f32 %v330_v62 }
  0x4a   : > { %v622_v63 = vpop.eup %621 }
  0x4b   : > { %v332_v0 = vmul.f32 0.6931472, %v622_v63 }
  0x4d   : > { %v333_v1 = vsub.f32 0.0, %v332_v0 }
  0x4f   : > { %v334_v2 = vmul.f32 %v333_v1, %v789_v3 }
  0x51   : > { %v335_v4 = vsel %vm286_vm10, %v334_v2, 0.0 }
  0x52   : > { %336 = vadd.xlane.f32.xlu0 %v335_v4 }
  0xa4   : > { %v360_v7 = vpop.xlane.xlu1 %359 }
  0xa5   : > { %v361_v15 = vrot.slane %v360_v7, 4 }
  0xa7   : > { %v362_v16 = vadd.f32 %v361_v15, %v360_v7 }
  0xa9   : > { %v363_v18 = vrot.slane %v362_v16, 2 }
  0xab   : > { %v364_v23 = vadd.f32 %v363_v18, %v362_v16 }
  0xac   : > { %v370_v14 = vpop.xlane.xlu1 %369 }
  0xad   : > { %v371_v3 = vrot.slane %v370_v14, 4  ;;  %v365_v27 = vrot.slane %v364_v23, 1 }
  0xaf   : > { %v372_v17 = vadd.f32 %v371_v3, %v370_v14  ;;  %v366_v31 = vadd.f32 %v365_v27, %v364_v23 }
  0xb0   : > { %v295_v5 = vpop.xlane.xlu0 %294 }
  0xb1   : > { %v296_v6 = vrot.slane %v295_v5, 4  ;;  %v373_v20 = vrot.slane %v372_v17, 2 }
  0xb3   : > { %v297_v8 = vadd.f32 %v296_v6, %v295_v5  ;;  %v374_v24 = vadd.f32 %v373_v20, %v372_v17 }
  0xb5   : > { %v298_v9 = vrot.slane %v297_v8, 2  ;;  %v375_v29 = vrot.slane %v374_v24, 1 }
  0xb7   : > { %v299_v11 = vadd.f32 %v298_v9, %v297_v8  ;;  %v376_v32 = vadd.f32 %v375_v29, %v374_v24 }
  0xb9   : > { %v300_v12 = vrot.slane %v299_v11, 1 }
  0xbb   : > { %v301_v13 = vadd.f32 %v300_v12, %v299_v11 }
  0xbd   : > { %542 = vpush %v301_v13 }
  0xc5   : > { %v337_v19 = vpop.xlane.xlu0 %336 }
  0xc6   : > { %v338_v21 = vrot.slane %v337_v19, 4 }
  0xc8   : > { %v339_v22 = vadd.f32 %v338_v21, %v337_v19 }
  0xca   : > { %v340_v25 = vrot.slane %v339_v22, 2 }
  0xcc   : > { %v341_v26 = vadd.f32 %v340_v25, %v339_v22 }
  0xce   : > { %v342_v28 = vrot.slane %v341_v26, 1 }
  0xd0   : > { %v343_v30 = vadd.f32 %v342_v28, %v341_v26 }
  0xd2   : > { %544 = vpush %v343_v30 }
  0xd3   : > { %546 = vpush %v366_v31 }
  0xd4   : > { %548 = vpush %v376_v32 }
  0xee   : > { %s543_s4 = spop %542 }
  0xef   : > { %v379_v34 = vstv %s543_s4 }
  0xf0   : > { %v380_v35 = vadd.f32 %v379_v34, %v378_v33 }
  0xf2   : > { %381 = vst [vmem:[#allocation2] sm:$0x1] %v380_v35 }
  0xf9   : > { %v397_v56 = vld [vmem:[#allocation2] sm:$0x1] }
 0x103   : > { %s545_s5 = spop %544 }
 0x104   : > { %v383_v38 = vstv %s545_s5  ;;  %s547_s6 = spop %546 }
 0x105   : > { %v384_v40 = vadd.f32 %v383_v38, %v382_v36  ;;  %v387_v41 = vstv %s547_s6  ;;  %s549_s7 = spop %548 }
 0x106   : > { %v388_v42 = vadd.f32 %v387_v41, %v386_v37  ;;  %v391_v43 = vstv %s549_s7 }
 0x107   : > { %385 = vst [vmem:[#allocation3] sm:$0x1] %v384_v40  ;;  %v392_v44 = vadd.f32 %v391_v43, %v390_v39 }
 0x108   : > { %389 = vst [vmem:[#allocation4] sm:$0x1] %v388_v42 }
 0x109   : > { %393 = vst [vmem:[#allocation5] sm:$0x1] %v392_v44 }
 0x10e   : > { %v398_v53 = vld [vmem:[#allocation3] sm:$0x1] }
 0x10f   : > { %v399_v54 = vld [vmem:[#allocation4] sm:$0x1]  ;;  %v402_v58 = vadd.f32 %v398_v53, %v397_v56 }
 0x110   : > { %v400_v45 = vld [vmem:[#allocation5] sm:$0x1]  ;;  %v420_v60 = vadd.f32 %v399_v54, %v397_v56 }
 0x111   : > { %v403_v46 = vmax.f32 %v400_v45, 1.0  ;;  %vm401_vm15 = vcmp.gt.f32.partialorder %v400_v45, 0.0 }
 0x112   : > { %v421_v0 = vadd.f32 %v420_v60, %v398_v53 }
 0x113   : > { %623 = vrcp.f32 %v403_v46  ;;  %v415_v50 = vand.u32 2147483648, %v403_v46  ;;  %v413_v52 = vand.u32 2147483647, %v403_v46  ;;  %vm409_vm12 = vweird.f32 %v403_v46 }
 0x115   : > { %v416_v57 = vor.u32 1.1754944e-38, %v415_v50  ;;  %vm414_vm14 = vcmp.eq.f32.partialorder %v413_v52, 8.507059e+37 }
 0x119   : > { %v624_v47 = vpop.eup %623 }
 0x11a   : > { %v405_v48 = vmul.f32 %v624_v47, %v403_v46  ;;  %vm410_vm11 = vweird.f32 %v624_v47 }
 0x11b   : > { %vm411_vm13 = vmor %vm409_vm12, %vm410_vm11 }
 0x11c   : > { %v406_v49 = vsub.f32 1.0, %v405_v48 }
 0x11e   : > { %v407_v51 = vmul.f32 %v624_v47, %v406_v49 }
 0x120   : > { %v408_v55 = vadd.f32 %v624_v47, %v407_v51 }
 0x122   : > { %v412_v59 = vsel %vm411_vm13, %v624_v47, %v408_v55 }
 0x123   : > { %v417_v61 = vsel %vm414_vm14, %v416_v57, %v412_v59 }
 0x124   : > { %v418_v62 = vmul.f32 %v417_v61, %v402_v58 }
 0x126   : > { %v419_v63 = vadd.f32 %v418_v62, %v399_v54 }
 0x128   : > { %v422_v1 = vsel %vm401_vm15, %v419_v63, %v421_v0 }
 0x129   : > { %423 = vst [vmem:[%s178_s20] sm:$0x1] %v422_v1 }
 0x12a   : > { %652 = shalt.err (!%p649_p5)
}
 0x12b   : > { %550 = dma.vmem_to_hbm [thread:$0]  (%p762_p4), %s436_s23, 16, %s438_s24, %s425_s25  }
 0x12c PF: > { %p556_p6 = scmp.ge.s32.totalorder %s703_s14, 2  ;;  %s449_s4 = sand.u32 1, %s683_s9  }
 0x12d   : > { %s450_s5 = scalar_lea.sflag [#allocation7], %s449_s4 }
 0x12e   : > { %p553_p7 = pnand %p556_p6, %p769_p8 }
 0x130   : > { %p554_p9 = pneg %p553_p7 }
 0x132   : > { %678 = dma.done.wait (%p554_p9), %s450_s5, 16  }
 0x133   : > { %680 = vsyncadd (%p554_p9), %s450_s5, 4294967280  ;;  %s15_s14 = sadd.s32 1, %s703_s14   ;;  %s866_s9 = smov %s687_s10 }
 0x134   : > { %p12_p10 = scmp.ge.s32.totalorder %s15_s14, 4   ;;  %s867_s10 = smov %s691_s11 }
 0x135   : > { %s868_s11 = smov %s775_s22  ;;  %s869_s12 = smov %s699_s13 }
 0x136   : > { %s870_s13 = smov %s872_s17  ;;  %14 = sbr.rel (!%p12_p10) target bundleno = 4 (0x4), region = 74 }
 0x13b   :  { %455 = vsyncpa [#allocation7], 1 }
 0x13c   :  { %457 = vsyncpa [#allocation7 + $0x1], 1 }

</bundles_post_ra>
